<compile_context>
chip_gen: v7x
topology: tpu7x:2x2x1
jax: 0.10.0
libtpu: 0.0.40
codegen_flags: <defaults>
</compile_context>

<pallas_src>
import functools

import jax
import jax.numpy as jnp
from jax.experimental import pallas as pl
from jax.experimental.pallas import tpu as pltpu

# ---- module hyper-parameters (synthetic, deterministic) ----
N_DIM = 32                 # n_dim == input_dim == v_dim == k_dim
N_HEADS = 2
N_KEYS = 8                 # key_sizes = [8, 8]
KNN = 32                   # >= every key size  ->  no_knn -> dense forward
K_DIM = N_DIM
HALF = K_DIM // 2
SIZE = N_KEYS * N_KEYS     # 64
V_DIM = N_DIM
LANES = 128
# rows packed per 128-wide super-row (4 for n_dim = v_dim = 32)
PACK = LANES // N_DIM if (LANES % N_DIM == 0 and V_DIM == N_DIM) else 1


def _fused_kernel(x_ref, m_ref, v_ref, o_ref):
    """One row tile:  o = relu(x @ M_bd) @ V_bd   (two MXU matmuls + one VPU max)."""
    h = jnp.dot(x_ref[...], m_ref[...], preferred_element_type=jnp.float32)
    scores = jnp.maximum(h, 0.0)                       # activation = relu
    o_ref[...] = jnp.dot(scores, v_ref[...],
                         preferred_element_type=jnp.float32).astype(o_ref.dtype)


def _fold_weights(wq, keys1, keys2):
    """Fold q-proj + per-head key matmuls + broadcast-add expansion into M [n_dim, size].

    dense_h[b, i1*S2+i2] = s1[b,i1] + s2[b,i2]
                         = (q1_h @ repeat(keys1[h], S2, ax=1))[b, .] +
                           (q2_h @ tile(keys2[h], S1))[b, .]
    so sum_h dense_h = x @ M with M = wq @ W, W stacked per head/half.
    """
    heads, half, s1 = keys1.shape
    s2 = keys2.shape[2]
    k1e = jnp.repeat(keys1, s2, axis=2)                # [heads, half, s1*s2]
    k2e = jnp.tile(keys2, (1, 1, s1))                  # [heads, half, s1*s2]
    w = jnp.concatenate([k1e, k2e], axis=1)            # [heads, 2*half, s1*s2]
    w = w.reshape(heads * 2 * half, s1 * s2)           # rows match wq's column order
    return wq @ w                                      # [n_dim, s1*s2]


def _choose_tile(n_superrows, target):
    """Row tile in super-rows: big, multiple of 8, >=2 grid steps when possible."""
    if n_superrows <= 8:
        return n_superrows                             # single tiny tile == full dim
    blk = min(target, pl.cdiv(n_superrows, 2))         # >=2 steps -> v7x megacore
    return max(8, ((blk + 7) // 8) * 8)


@functools.partial(jax.jit, static_argnames=("tile_superrows",))
def lowrank_approx_2layer(x, wq, keys1, keys2, values, *, tile_superrows=1024):
    """Dense (no_knn) forward.  x: [..., n_dim] -> [..., v_dim]."""
    orig_shape = x.shape
    n_dim = orig_shape[-1]
    xf = x.reshape(-1, n_dim).astype(jnp.float32)
    bs = xf.shape[0]
    size, v_dim = values.shape

    # Fold everything before the ReLU into one matrix, then block-diagonalize so
    # PACK rows share one lane-dense 128-wide super-row.
    m = _fold_weights(wq, keys1, keys2)                           # [n_dim, size]
    eye = jnp.eye(PACK, dtype=jnp.float32)
    m_bd = jnp.kron(eye, m)                                       # [PACK*n_dim, PACK*size]
    v_bd = jnp.kron(eye, values.astype(jnp.float32))              # [PACK*size, PACK*v_dim]

    n_super = pl.cdiv(bs, PACK)
    blk = _choose_tile(n_super, tile_superrows)
    grid = pl.cdiv(n_super, blk)
    rows_pad = grid * blk * PACK
    xp = jnp.pad(xf, ((0, rows_pad - bs), (0, 0))).reshape(grid * blk, PACK * n_dim)

    out = pl.pallas_call(
        _fused_kernel,
        out_shape=jax.ShapeDtypeStruct((grid * blk, PACK * v_dim), jnp.float32),
        grid_spec=pltpu.PrefetchScalarGridSpec(
            num_scalar_prefetch=0,
            grid=(grid,),
            in_specs=[
                pl.BlockSpec((blk, PACK * n_dim), lambda i: (i, 0)),          # x rows
                pl.BlockSpec((PACK * n_dim, PACK * size), lambda i: (0, 0)),  # folded M (resident)
                pl.BlockSpec((PACK * size, PACK * v_dim), lambda i: (0, 0)),  # values (resident)
            ],
            out_specs=pl.BlockSpec((blk, PACK * v_dim), lambda i: (i, 0)),
        ),
        compiler_params=pltpu.CompilerParams(
            dimension_semantics=("parallel",),
            vmem_limit_bytes=32 * 1024 * 1024,
        ),
    )(xp, m_bd, v_bd)

    out = out.reshape(rows_pad, v_dim)[:bs]
    return out.reshape(orig_shape[:-1] + (v_dim,)).astype(x.dtype)


def _reference(x, wq, keys1, keys2, values):
    """Pure-JAX reference of the module's dense forward path (unfused)."""
    q = x @ wq
    bs = x.shape[0]
    heads, half, _ = keys1.shape
    total = jnp.zeros((bs, values.shape[0]), jnp.float32)
    for h in range(heads):
        qh = q[:, h * K_DIM:(h + 1) * K_DIM]
        s1 = qh[:, :half] @ keys1[h]
        s2 = qh[:, half:] @ keys2[h]
        total = total + (s1[:, :, None] + s2[:, None, :]).reshape(bs, -1)
    return jnp.maximum(total, 0.0) @ values


if __name__ == "__main__":
    key = jax.random.PRNGKey(0)
    kx, kq, kk1, kk2, kv, kx2 = jax.random.split(key, 6)

    std = N_DIM ** (-0.5)                             # custom_init=0, weight_scale=1.0
    # torch layouts, then pre-transpose for the kernel (glue).
    wq_torch = jax.random.normal(kq, (N_DIM * N_HEADS, N_DIM), jnp.float32) * std
    keys1_torch = jax.random.normal(kk1, (N_HEADS, N_KEYS, HALF), jnp.float32) * std
    keys2_torch = jax.random.normal(kk2, (N_HEADS, N_KEYS, HALF), jnp.float32) * std
    values = jax.random.normal(kv, (SIZE, V_DIM), jnp.float32) * std

    wq = wq_torch.T                                   # [n_dim, heads*k_dim]
    keys1 = jnp.transpose(keys1_torch, (0, 2, 1))     # [heads, half, n_keys]
    keys2 = jnp.transpose(keys2_torch, (0, 2, 1))

    # Small check: prefix shape (2, 8) -> bs = 16 rows (single tiny tile).
    x_small = jax.random.normal(kx, (2, 8, N_DIM), jnp.float32)
    out = lowrank_approx_2layer(x_small, wq, keys1, keys2, values)
    out = jax.block_until_ready(out)                  # output.view_as(input)
    ref = _reference(x_small.reshape(-1, N_DIM), wq, keys1, keys2, values).reshape(x_small.shape)
    assert out.shape == x_small.shape
    assert jnp.allclose(out, ref, atol=1e-4, rtol=1e-4), "small-shape mismatch vs reference"

    # Ragged, multi-step-grid check: bs = 2080 rows (padding + 2 parallel grid steps).
    x_big = jax.random.normal(kx2, (4, 520, N_DIM), jnp.float32)
    out_b = jax.block_until_ready(lowrank_approx_2layer(x_big, wq, keys1, keys2, values))
    ref_b = _reference(x_big.reshape(-1, N_DIM), wq, keys1, keys2, values).reshape(x_big.shape)
    assert out_b.shape == x_big.shape
    assert jnp.allclose(out_b, ref_b, atol=1e-4, rtol=1e-4), "large-shape mismatch vs reference"

    # TODO(synk): sparse knn / two_stage / EmbeddingBag-gather paths not implemented;
    # this instance uses the module's dense (`no_knn`) forward branch.
    print("KERNEL_OK")
</pallas_src>

<mosaic_0001>
module attributes {stable_mosaic.version = 11 : i64} {
  func.func @_fused_kernel(%arg0: i32, %arg1: memref<4x128xf32, #tpu.memory_space<vmem>>, %arg2: memref<128x256xf32, #tpu.memory_space<vmem>>, %arg3: memref<256x128xf32, #tpu.memory_space<vmem>>, %arg4: memref<4x128xf32, #tpu.memory_space<vmem>>) attributes {dimension_semantics = [#tpu.dimension_semantics<parallel>], iteration_bounds = array<i64: 1>, scalar_prefetch = 0 : i64, scratch_operands = 0 : i64, tpu.core_type = #tpu.core_type<tc>, window_params = [{transform_indices = @transform_0, window_bounds = array<i64: 4, 128>}, {pipeline_mode = #tpu.pipeline_mode<synchronous>, transform_indices = @transform_1, window_bounds = array<i64: 128, 256>}, {pipeline_mode = #tpu.pipeline_mode<synchronous>, transform_indices = @transform_2, window_bounds = array<i64: 256, 128>}, {transform_indices = @transform_3, window_bounds = array<i64: 4, 128>}]} {
    %c0 = arith.constant 0 : index
    %c0_0 = arith.constant 0 : index
    %0 = vector.load %arg1[%c0, %c0_0] : memref<4x128xf32, #tpu.memory_space<vmem>>, vector<4x128xf32>
    %c0_1 = arith.constant 0 : index
    %c0_2 = arith.constant 0 : index
    %1 = vector.load %arg2[%c0_1, %c0_2] : memref<128x256xf32, #tpu.memory_space<vmem>>, vector<128x256xf32>
    %cst = arith.constant dense<0.000000e+00> : vector<4x256xf32>
    %2 = tpu.matmul %0, %1, %cst {dimension_numbers = #tpu.dot_dimension_numbers<[1], [0], [0], [1], [0, 0, 1, 1], [], []>} : vector<4x128xf32>, vector<128x256xf32>, vector<4x256xf32> -> vector<4x256xf32>
    %cst_3 = arith.constant 0.000000e+00 : f32
    %3 = vector.broadcast %cst_3 : f32 to vector<4x256xf32>
    %4 = arith.maximumf %2, %3 : vector<4x256xf32>
    %c0_4 = arith.constant 0 : index
    %c0_5 = arith.constant 0 : index
    %5 = vector.load %arg3[%c0_4, %c0_5] : memref<256x128xf32, #tpu.memory_space<vmem>>, vector<256x128xf32>
    %cst_6 = arith.constant dense<0.000000e+00> : vector<4x128xf32>
    %6 = tpu.matmul %4, %5, %cst_6 {dimension_numbers = #tpu.dot_dimension_numbers<[1], [0], [0], [1], [0, 0, 1, 1], [], []>} : vector<4x256xf32>, vector<256x128xf32>, vector<4x128xf32> -> vector<4x128xf32>
    %c0_7 = arith.constant 0 : index
    %c0_8 = arith.constant 0 : index
    %7 = vector.load %arg4[%c0_7, %c0_8] : memref<4x128xf32, #tpu.memory_space<vmem>>, vector<4x128xf32>
    tpu.vector_store %arg4[%c0_7, %c0_8], %6 {strides = array<i32>} : memref<4x128xf32, #tpu.memory_space<vmem>>, vector<4x128xf32>,
    return
  }
  func.func @transform_0(%arg0: i32) -> (i32, i32) {
    %c0_i32 = arith.constant 0 : i32
    %c0_i32_0 = arith.constant 0 : i32
    return %arg0, %c0_i32 : i32, i32
  }
  func.func @transform_1(%arg0: i32) -> (i32, i32) {
    %c0_i32 = arith.constant 0 : i32
    %c0_i32_0 = arith.constant 0 : i32
    %c0_i32_1 = arith.constant 0 : i32
    return %c0_i32, %c0_i32_0 : i32, i32
  }
  func.func @transform_2(%arg0: i32) -> (i32, i32) {
    %c0_i32 = arith.constant 0 : i32
    %c0_i32_0 = arith.constant 0 : i32
    %c0_i32_1 = arith.constant 0 : i32
    return %c0_i32, %c0_i32_0 : i32, i32
  }
  func.func @transform_3(%arg0: i32) -> (i32, i32) {
    %c0_i32 = arith.constant 0 : i32
    %c0_i32_0 = arith.constant 0 : i32
    return %arg0, %c0_i32 : i32, i32
  }
}

</mosaic_0001>

<bundles_post_ra>
// kernel: lowrank_approx_2layer.1
= control target key start
LH: loop header
LB: loop body
LE: loop exit
PB: predicated region body
PF: predicated region fallthrough
CT: control target
= control target key end

     0   :  { %v327_v3 = vmov 0.0   ;;  %s546_s1 = inlined_call_operand.vmem [shape: f32[128,256], index: 1, kind: input, shape index: {}]   ;;  %s547_s2 = inlined_call_operand.vmem [shape: f32[256,128], index: 2, kind: input, shape index: {}]   ;;  %s548_s0 = inlined_call_operand.vmem [shape: f32[4,128], index: 0, kind: input, shape index: {}]   ;;  %s549_s3 = inlined_call_operand.vmem [shape: f32[4,128], index: 3, kind: output, shape index: {}]  }
   0x1   :  { %v16_v0 = vld [vmem:[%s546_s1 + $0x8] sm:$0xff]  ;;  %v18_v1 = vld [vmem:[%s546_s1 + $0x18] sm:$0xff]  ;;  %v15_v2 = vld [vmem:[%s546_s1] sm:$0xff]  ;;  %111 = vmatprep.mubr.f32.mxu0 %v327_v3 }
   0x2   :  { %v262_v4 = vpack.c.bf16 %v18_v1, %v16_v0  ;;  %v17_v5 = vld [vmem:[%s546_s1 + $0x10] sm:$0xff]  ;;  %v20_v6 = vld [vmem:[%s546_s1 + $0x28] sm:$0xff]  ;;  %v22_v7 = vld [vmem:[%s546_s1 + $0x38] sm:$0xff] }
   0x3   :  { %v264_v8 = vpack.c.bf16 %v17_v5, %v15_v2  ;;  %v266_v9 = vpack.c.bf16 %v22_v7, %v20_v6  ;;  %v19_v10 = vld [vmem:[%s546_s1 + $0x20] sm:$0xff]  ;;  %v21_v11 = vld [vmem:[%s546_s1 + $0x30] sm:$0xff]  ;;  %v24_v12 = vld [vmem:[%s546_s1 + $0x48] sm:$0xff] }
   0x4   :  { %263 = vmatprep.subr.bf16.mxu0 %v262_v4  ;;  %v26_v13 = vld [vmem:[%s546_s1 + $0x58] sm:$0xff]  ;;  %v268_v14 = vpack.c.bf16 %v21_v11, %v19_v10  ;;  %v23_v16 = vld [vmem:[%s546_s1 + $0x40] sm:$0xff]  ;;  %v25_v17 = vld [vmem:[%s546_s1 + $0x50] sm:$0xff] }
   0x5   :  { %265 = vmatpush1.bf16.msra.mxu0 %v264_v8  ;;  %v270_v15 = vpack.c.bf16 %v26_v13, %v24_v12  ;;  %v28_v18 = vld [vmem:[%s546_s1 + $0x68] sm:$0xff]  ;;  %v30_v19 = vld [vmem:[%s546_s1 + $0x78] sm:$0xff]  ;;  %v272_v20 = vpack.c.bf16 %v25_v17, %v23_v16  ;;  %v27_v22 = vld [vmem:[%s546_s1 + $0x60] sm:$0xff] }
   0x6   :  { %267 = vmatprep.subr.bf16.mxu0 %v266_v9  ;;  %v274_v21 = vpack.c.bf16 %v30_v19, %v28_v18  ;;  %v29_v23 = vld [vmem:[%s546_s1 + $0x70] sm:$0xff]  ;;  %v32_v24 = vld [vmem:[%s546_s1 + $0x88] sm:$0xff]  ;;  %v34_v25 = vld [vmem:[%s546_s1 + $0x98] sm:$0xff] }
   0x7   :  { %v31_v26 = vld [vmem:[%s546_s1 + $0x80] sm:$0xff]  ;;  %v33_v27 = vld [vmem:[%s546_s1 + $0x90] sm:$0xff]  ;;  %v137_v29 = vld [vmem:[%s547_s2 + $0x88] sm:$0xff]  ;;  %v276_v31 = vpack.c.bf16 %v29_v23, %v27_v22  ;;  %v278_v36 = vpack.c.bf16 %v34_v25, %v32_v24 }
   0x8   :  { %v136_v28 = vld [vmem:[%s547_s2 + $0x80] sm:$0xff]  ;;  %v121_v33 = vld [vmem:[%s547_s2 + $0x8] sm:$0xff]  ;;  %v138_v34 = vld [vmem:[%s547_s2 + $0x90] sm:$0xff]  ;;  %v280_v46 = vpack.c.bf16 %v33_v27, %v31_v26 }
   0x9   :  { %269 = vmatpush1.bf16.msra.mxu0 %v268_v14  ;;  %v120_v30 = vld [vmem:[%s547_s2] sm:$0xff]  ;;  %v294_v32 = vpack.c.bf16 %v137_v29, %v136_v28  ;;  %v139_v35 = vld [vmem:[%s547_s2 + $0x98] sm:$0xff]  ;;  %v122_v39 = vld [vmem:[%s547_s2 + $0x10] sm:$0xff] }
   0xa   :  { %271 = vmatprep.subr.bf16.mxu0 %v270_v15  ;;  %v296_v37 = vpack.c.bf16 %v121_v33, %v120_v30  ;;  %v298_v38 = vpack.c.bf16 %v139_v35, %v138_v34  ;;  %v123_v40 = vld [vmem:[%s547_s2 + $0x18] sm:$0xff]  ;;  %v140_v41 = vld [vmem:[%s547_s2 + $0xa0] sm:$0xff]  ;;  %v36_v42 = vld [vmem:[%s546_s1 + $0xa8] sm:$0xff] }
   0xb   :  { %v38_v43 = vld [vmem:[%s546_s1 + $0xb8] sm:$0xff]  ;;  %295 = vmatprep.subr.bf16.mxu1 %v294_v32  ;;  %v141_v44 = vld [vmem:[%s547_s2 + $0xa8] sm:$0xff]  ;;  %v300_v45 = vpack.c.bf16 %v123_v40, %v122_v39  ;;  %v35_v47 = vld [vmem:[%s546_s1 + $0xa0] sm:$0xff] }
   0xc   :  { %297 = vmatpush3.bf16.msra.mxu1 %v296_v37  ;;  %v302_v48 = vpack.c.bf16 %v141_v44, %v140_v41  ;;  %v124_v49 = vld [vmem:[%s547_s2 + $0x20] sm:$0xff]  ;;  %v125_v50 = vld [vmem:[%s547_s2 + $0x28] sm:$0xff]  ;;  %v282_v51 = vpack.c.bf16 %v38_v43, %v36_v42  ;;  %v37_v52 = vld [vmem:[%s546_s1 + $0xb0] sm:$0xff] }
   0xd   :  { %273 = vmatpush1.bf16.msra.mxu0 %v272_v20  ;;  %299 = vmatprep.subr.bf16.mxu1 %v298_v38  ;;  %v142_v53 = vld [vmem:[%s547_s2 + $0xb0] sm:$0xff]  ;;  %v143_v54 = vld [vmem:[%s547_s2 + $0xb8] sm:$0xff]  ;;  %v40_v55 = vld [vmem:[%s546_s1 + $0xc8] sm:$0xff]  ;;  %v304_v57 = vpack.c.bf16 %v125_v50, %v124_v49  ;;  %v284_v58 = vpack.c.bf16 %v37_v52, %v35_v47 }
   0xe   :  { %275 = vmatprep.subr.bf16.mxu0 %v274_v21  ;;  %v42_v56 = vld [vmem:[%s546_s1 + $0xd8] sm:$0xff]  ;;  %v39_v59 = vld [vmem:[%s546_s1 + $0xc0] sm:$0xff]  ;;  %v306_v60 = vpack.c.bf16 %v143_v54, %v142_v53  ;;  %v126_v61 = vld [vmem:[%s547_s2 + $0x30] sm:$0xff] }
   0xf   :  { %v127_v62 = vld [vmem:[%s547_s2 + $0x38] sm:$0xff]  ;;  %v286_v63 = vpack.c.bf16 %v42_v56, %v40_v55  ;;  %v41_v0 = vld [vmem:[%s546_s1 + $0xd0] sm:$0xff]  ;;  %v144_v1 = vld [vmem:[%s547_s2 + $0xc0] sm:$0xff] }
  0x10   :  { %301 = vmatpush3.bf16.msra.mxu1 %v300_v45  ;;  %v145_v2 = vld [vmem:[%s547_s2 + $0xc8] sm:$0xff]  ;;  %v46_v4 = vld [vmem:[%s546_s1 + $0xf8] sm:$0xff]  ;;  %v308_v5 = vpack.c.bf16 %v127_v62, %v126_v61  ;;  %v288_v6 = vpack.c.bf16 %v41_v0, %v39_v59  ;;  %v43_v7 = vld [vmem:[%s546_s1 + $0xe0] sm:$0xff] }
  0x11   :  { %277 = vmatpush1.bf16.msra.mxu0 %v276_v31  ;;  %303 = vmatprep.subr.bf16.mxu1 %v302_v48  ;;  %v44_v3 = vld [vmem:[%s546_s1 + $0xe8] sm:$0xff]  ;;  %v310_v8 = vpack.c.bf16 %v145_v2, %v144_v1  ;;  %v128_v9 = vld [vmem:[%s547_s2 + $0x40] sm:$0xff]  ;;  %v45_v12 = vld [vmem:[%s546_s1 + $0xf0] sm:$0xff] }
  0x12   :  { %279 = vmatprep.subr.bf16.mxu0 %v278_v36  ;;  %v129_v10 = vld [vmem:[%s547_s2 + $0x48] sm:$0xff]  ;;  %v290_v11 = vpack.c.bf16 %v46_v4, %v44_v3  ;;  %v146_v13 = vld [vmem:[%s547_s2 + $0xd0] sm:$0xff]  ;;  %v147_v14 = vld [vmem:[%s547_s2 + $0xd8] sm:$0xff]  ;;  %v292_v16 = vpack.c.bf16 %v45_v12, %v43_v7 }
  0x13   :  { %v312_v15 = vpack.c.bf16 %v129_v10, %v128_v9  ;;  %v314_v17 = vpack.c.bf16 %v147_v14, %v146_v13  ;;  %v130_v18 = vld [vmem:[%s547_s2 + $0x50] sm:$0xff]  ;;  %v131_v19 = vld [vmem:[%s547_s2 + $0x58] sm:$0xff]  ;;  %v148_v20 = vld [vmem:[%s547_s2 + $0xe0] sm:$0xff] }
  0x14   :  { %305 = vmatpush3.bf16.msra.mxu1 %v304_v57  ;;  %v149_v21 = vld [vmem:[%s547_s2 + $0xe8] sm:$0xff]  ;;  %v316_v22 = vpack.c.bf16 %v131_v19, %v130_v18  ;;  %v14_v23 = vld [vmem:[%s548_s0] sm:$0xf]  ;;  %v150_v28 = vld [vmem:[%s547_s2 + $0xf0] sm:$0xff] }
  0x15   :  { %281 = vmatpush1.bf16.msra.mxu0 %v280_v46  ;;  %307 = vmatprep.subr.bf16.mxu1 %v306_v60  ;;  %v318_v24 = vpack.c.bf16 %v149_v21, %v148_v20  ;;  %v132_v25 = vld [vmem:[%s547_s2 + $0x60] sm:$0xff]  ;;  %v133_v26 = vld [vmem:[%s547_s2 + $0x68] sm:$0xff]  ;;  %v151_v29 = vld [vmem:[%s547_s2 + $0xf8] sm:$0xff] }
  0x16   :  { %283 = vmatprep.subr.bf16.mxu0 %v282_v51  ;;  %v320_v27 = vpack.c.bf16 %v133_v26, %v132_v25  ;;  %v322_v30 = vpack.c.bf16 %v151_v29, %v150_v28  ;;  %v134_v31 = vld [vmem:[%s547_s2 + $0x70] sm:$0xff]  ;;  %v135_v32 = vld [vmem:[%s547_s2 + $0x78] sm:$0xff] }
  0x17   :  { %v324_v33 = vpack.c.bf16 %v135_v32, %v134_v31 }
  0x18   :  { %309 = vmatpush3.bf16.msra.mxu1 %v308_v5 }
  0x19   :  { %285 = vmatpush1.bf16.msra.mxu0 %v284_v58  ;;  %311 = vmatprep.subr.bf16.mxu1 %v310_v8 }
  0x1a   :  { %287 = vmatprep.subr.bf16.mxu0 %v286_v63 }
  0x1c   :  { %313 = vmatpush3.bf16.msra.mxu1 %v312_v15 }
  0x1d   :  { %289 = vmatpush1.bf16.msra.mxu0 %v288_v6  ;;  %315 = vmatprep.subr.bf16.mxu1 %v314_v17 }
  0x1e   :  { %291 = vmatprep.subr.bf16.mxu0 %v290_v11 }
  0x20   :  { %317 = vmatpush3.bf16.msra.mxu1 %v316_v22 }
  0x21   :  { %293 = vmatpush1.bf16.msra.mxu0 %v292_v16  ;;  %319 = vmatprep.subr.bf16.mxu1 %v318_v24 }
  0x24   :  { %112 = vmatmul.mubr.f32.vlgmr.msra.gmra.mrb[0].mxu0 %v14_v23  ;;  %321 = vmatpush3.bf16.msra.mxu1 %v320_v27 }
  0x25   :  { %323 = vmatprep.subr.bf16.mxu1 %v322_v30 }
  0x28   :  { %325 = vmatpush3.bf16.msra.mxu1 %v324_v33 }
  0xf7   :  { %v113_v34 = vpop.f32.mrb[0].mxu0 }
  0xf8   :  { %v115_v35 = vpop.f32.mrb[1].mxu0  ;;  %v118_v37 = vmax.f32 %v113_v34, 0.0 }
  0xf9   :  { %v119_v36 = vmax.f32 %v115_v35, 0.0 }
  0xfb   :  { %216 = vmatprep.mubr.f32.mxu1 %v119_v36 }
  0xfc   :  { %217 = vmatmul.mubr.f32.vlgmr.msra.gmra.mrb[0].mxu1 %v118_v37 }
 0x1cf   :  { %v259_v38 = vpop.f32.mrb[0].mxu1 }
 0x1d0   :  { %v260_v39 = vpop.f32.mrb[1].mxu1 }
 0x1d1   :  { %v261_v40 = vadd.f32 %v260_v39, %v259_v38 }
 0x1d3   :  { %222 = vst [vmem:[%s549_s3] sm:$0xf] %v261_v40 }

</bundles_post_ra>
